<compile_context>
chip_gen: v6e
topology: v6e:2x2x1
jax: 0.10.0
libtpu: 0.0.40
codegen_flags: <defaults>
</compile_context>

<pallas_src>
import functools

import jax
import jax.numpy as jnp
from jax.experimental import pallas as pl
from jax.experimental.pallas import tpu as pltpu


def _round_up(n, m):
    return ((n + m - 1) // m) * m


def _vmem_capacity_bytes():
    try:
        return int(pltpu.get_tpu_info().vmem_capacity_bytes)
    except Exception:
        return 64 * 1024 * 1024   # conservative (v7x-sized) fallback


def _pick_ff_tile(d_ff, ff_tile=None):
    """Pick a d_ff chunk size that divides d_ff (prefer ~512, multiple of 128)."""
    if ff_tile is not None:
        assert d_ff % ff_tile == 0
        return ff_tile
    if d_ff <= 512 or d_ff % 128 != 0:
        return d_ff                      # small / odd d_ff: no streaming
    t = 512
    while d_ff % t != 0:
        t -= 128                         # d_ff % 128 == 0 -> terminates at >=128
    return t


def _resblock_kernel(x_ref,
                     w1v_ref, w1g_ref, b1v_ref, b1g_ref,
                     w2f_ref, b2f_ref,
                     gamma_ref, beta_ref,
                     o_ref, acc_ref, *, eps):
    k = pl.program_id(1)                                  # d_ff chunk index

    @pl.when(k == 0)
    def _():
        acc_ref[...] = jnp.zeros_like(acc_ref)

    x_bf = x_ref[...].astype(jnp.bfloat16)                # MXU operand

    # ---- linear1 value/gate for this d_ff chunk (bf16 x bf16 -> f32 acc) ----
    hv = jnp.dot(x_bf, w1v_ref[...],
                 preferred_element_type=jnp.float32) + b1v_ref[...]
    hg = jnp.dot(x_bf, w1g_ref[...],
                 preferred_element_type=jnp.float32) + b1g_ref[...]

    # ---- GLU for this chunk in bf16 (second matmul wants bf16 anyway) ----
    h_bf = hv.astype(jnp.bfloat16) * jax.nn.sigmoid(hg.astype(jnp.bfloat16))

    # ---- fused linear2 (value|gate) partial, accumulated in f32 VMEM ----
    acc_ref[...] += jnp.dot(h_bf, w2f_ref[...],
                            preferred_element_type=jnp.float32)

    # ---- epilogue on the last d_ff chunk: GLU #2, residual, LayerNorm ----
    @pl.when(k == pl.num_programs(1) - 1)
    def _():
        d = o_ref.shape[-1]
        y_full = acc_ref[...] + b2f_ref[...]               # (tm, 2*d_model) f32
        y = y_full[:, :d] * jax.nn.sigmoid(y_full[:, d:])  # GLU, f32
        z = y + x_ref[...].astype(jnp.float32)             # residual add
        mean = jnp.mean(z, axis=-1, keepdims=True)
        zc = z - mean
        var = jnp.mean(zc * zc, axis=-1, keepdims=True)
        out = zc * jax.lax.rsqrt(var + eps) * gamma_ref[...] + beta_ref[...]
        o_ref[...] = out.astype(o_ref.dtype)


def prepare_params(params, compute_dtype=jnp.bfloat16):
    """Split/transpose/cast weights ONCE, outside the hot path.

    linear1 is split into value/gate halves (each streamed along d_ff).
    linear2 value/gate halves are FUSED into one (d_ff, 2*d_model) RHS so the
    second matmul fills the 256-wide MXU on v6e/v7x.
    """
    w1, b1, w2, b2, gamma, beta = params
    d_ff = w1.shape[0] // 2
    w1v = jnp.asarray(w1[:d_ff].T, compute_dtype)          # (d_model, d_ff)
    w1g = jnp.asarray(w1[d_ff:].T, compute_dtype)          # (d_model, d_ff)
    w2f = jnp.asarray(w2.T, compute_dtype)                 # (d_ff, 2*d_model) = [val|gate]
    b1v = jnp.asarray(b1[:d_ff], jnp.float32).reshape(1, -1)
    b1g = jnp.asarray(b1[d_ff:], jnp.float32).reshape(1, -1)
    b2f = jnp.asarray(b2, jnp.float32).reshape(1, -1)      # (1, 2*d_model)
    gamma2 = jnp.asarray(gamma, jnp.float32).reshape(1, -1)
    beta2 = jnp.asarray(beta, jnp.float32).reshape(1, -1)
    return (w1v, w1g, b1v, b1g, w2f, b2f, gamma2, beta2)


def resblock_forward(x, prepared, *, tile_rows=None, ff_tile=None, eps=1e-5):
    """x: [B, S, d_model] -> [B, S, d_model]."""
    B, S, d_model = x.shape
    (w1v, w1g, b1v, b1g, w2f, b2f, gamma2, beta2) = prepared
    d_ff = w1v.shape[1]

    N = B * S
    x2d = x.reshape(N, d_model)

    vmem_cap = _vmem_capacity_bytes()
    if tile_rows is None:
        # 128-MiB-VMEM parts (v5e/v6e) take a larger row tile; v7x (64 MiB) smaller.
        tile_rows = 512 if vmem_cap >= 96 * 1024 * 1024 else 256

    # Row tile: sublane-aligned (bf16 I/O wants 16), clamped to problem size,
    # forced to >=2 row blocks when possible so both v7x TensorCores get work.
    sub = 16 if x.dtype == jnp.bfloat16 else 8
    tm = max(sub, min(tile_rows, _round_up(N, sub)))
    if pl.cdiv(N, tm) < 2 and N > sub:
        tm = _round_up(pl.cdiv(N, 2), sub)
    n_rows = pl.cdiv(N, tm)            # last row block may be partial (no host pad)

    tk = _pick_ff_tile(d_ff, ff_tile)  # streamed d_ff chunk
    n_ff = d_ff // tk

    kernel = functools.partial(_resblock_kernel, eps=eps)

    out2d = pl.pallas_call(
        kernel,
        out_shape=jax.ShapeDtypeStruct((N, d_model), x.dtype),
        grid_spec=pltpu.PrefetchScalarGridSpec(
            num_scalar_prefetch=0,
            grid=(n_rows, n_ff),
            in_specs=[
                pl.BlockSpec((tm, d_model), lambda i, k: (i, 0)),       # x rows (resident over k)
                pl.BlockSpec((d_model, tk), lambda i, k: (0, k)),       # W1 value chunk (bf16)
                pl.BlockSpec((d_model, tk), lambda i, k: (0, k)),       # W1 gate  chunk (bf16)
                pl.BlockSpec((1, tk), lambda i, k: (0, k)),             # b1 value chunk
                pl.BlockSpec((1, tk), lambda i, k: (0, k)),             # b1 gate  chunk
                pl.BlockSpec((tk, 2 * d_model), lambda i, k: (k, 0)),   # fused W2 chunk (bf16)
                pl.BlockSpec((1, 2 * d_model), lambda i, k: (0, 0)),    # fused b2
                pl.BlockSpec((1, d_model), lambda i, k: (0, 0)),        # gamma
                pl.BlockSpec((1, d_model), lambda i, k: (0, 0)),        # beta
            ],
            out_specs=pl.BlockSpec((tm, d_model), lambda i, k: (i, 0)),
            scratch_shapes=[pltpu.VMEM((tm, 2 * d_model), jnp.float32)],  # linear2 accumulator
        ),
        compiler_params=pltpu.CompilerParams(
            dimension_semantics=("parallel", "arbitrary"),
            # ~75% of physical VMEM per generation (96 MiB on v5e/v6e, 48 MiB on v7x).
            vmem_limit_bytes=min(int(vmem_cap * 3 // 4), 100 * 1024 * 1024),
        ),
    )(x2d, w1v, w1g, b1v, b1g, w2f, b2f, gamma2, beta2)

    return out2d.reshape(B, S, d_model)


def init_params(key, d_model, d_ff):
    """Deterministic parameter init (uniform, PyTorch-Linear-style bounds)."""
    k1, k2, k3, k4 = jax.random.split(key, 4)
    bound1 = 1.0 / jnp.sqrt(d_model)
    bound2 = 1.0 / jnp.sqrt(d_ff)
    w1 = jax.random.uniform(k1, (2 * d_ff, d_model), jnp.float32, -bound1, bound1)
    b1 = jax.random.uniform(k2, (2 * d_ff,), jnp.float32, -bound1, bound1)
    w2 = jax.random.uniform(k3, (2 * d_model, d_ff), jnp.float32, -bound2, bound2)
    b2 = jax.random.uniform(k4, (2 * d_model,), jnp.float32, -bound2, bound2)
    gamma = jnp.ones((d_model,), jnp.float32)   # nn.LayerNorm default weight
    beta = jnp.zeros((d_model,), jnp.float32)   # nn.LayerNorm default bias
    return w1, b1, w2, b2, gamma, beta


def resblock_reference(x, params, eps=1e-5):
    """Exact f32 math of the PyTorch forward (dropout=0)."""
    w1, b1, w2, b2, gamma, beta = params
    residual = x
    h = x @ w1.T + b1
    a, g = jnp.split(h, 2, axis=-1)
    h = a * jax.nn.sigmoid(g)
    y = h @ w2.T + b2
    a, g = jnp.split(y, 2, axis=-1)
    y = a * jax.nn.sigmoid(g)
    z = y + residual
    mean = jnp.mean(z, axis=-1, keepdims=True)
    var = jnp.mean((z - mean) ** 2, axis=-1, keepdims=True)
    return (z - mean) * jax.lax.rsqrt(var + eps) * gamma + beta


def resblock_reference_matched(x, params, eps=1e-5):
    """Reference mirroring the kernel precision (bf16 MXU operands + bf16 GLU#1,
    f32 accumulation, f32 GLU#2 / LayerNorm epilogue)."""
    w1, b1, w2, b2, gamma, beta = params
    xb = x.astype(jnp.bfloat16)
    w1b = w1.astype(jnp.bfloat16)
    w2b = w2.astype(jnp.bfloat16)
    h = jnp.dot(xb, w1b.T, preferred_element_type=jnp.float32) + b1
    a, g = jnp.split(h, 2, axis=-1)
    hb = a.astype(jnp.bfloat16) * jax.nn.sigmoid(g.astype(jnp.bfloat16))
    y = jnp.dot(hb, w2b.T, preferred_element_type=jnp.float32) + b2
    a, g = jnp.split(y, 2, axis=-1)
    y = a * jax.nn.sigmoid(g)
    z = y + x
    mean = jnp.mean(z, axis=-1, keepdims=True)
    zc = z - mean
    var = jnp.mean(zc * zc, axis=-1, keepdims=True)
    return zc * jax.lax.rsqrt(var + eps) * gamma + beta


if __name__ == "__main__":
    def _run_case(key, B, S, d_model, d_ff):
        kx, kp = jax.random.split(key)
        x = jax.random.normal(kx, (B, S, d_model), jnp.float32)
        params = init_params(kp, d_model, d_ff)
        prepared = prepare_params(params)

        out = jax.block_until_ready(resblock_forward(x, prepared))
        assert out.shape == (B, S, d_model)

        # Tight check against the precision-matched reference.
        ref_m = resblock_reference_matched(x, params)
        err_m = float(jnp.max(jnp.abs(out - ref_m)))
        assert jnp.allclose(out, ref_m, atol=2.5e-2, rtol=2.5e-2), err_m

        # Loose check against the exact-f32 PyTorch math (bf16 operands bound error).
        ref_f = resblock_reference(x, params)
        err_f = float(jnp.max(jnp.abs(out - ref_f)))
        assert err_f < 2e-1, err_f

    key = jax.random.PRNGKey(0)
    k1, k2 = jax.random.split(key)

    # Small, spec-consistent case: d_model=32, d_ff=4*d_model, B=2, S=8.
    _run_case(k1, B=2, S=8, d_model=32, d_ff=128)

    # Slightly larger case exercising d_ff streaming (2 chunks), the fused
    # linear2 RHS and a partial last row block (no host-side padding).
    _run_case(k2, B=2, S=100, d_model=128, d_ff=1024)

    print("KERNEL_OK")
</pallas_src>

<mosaic_0001>
module attributes {stable_mosaic.version = 11 : i64} {
  func.func @_resblock_kernel(%arg0: i32, %arg1: i32, %arg2: memref<8x32xf32, #tpu.memory_space<vmem>>, %arg3: memref<32x128xbf16, #tpu.memory_space<vmem>>, %arg4: memref<32x128xbf16, #tpu.memory_space<vmem>>, %arg5: memref<1x128xf32, #tpu.memory_space<vmem>>, %arg6: memref<1x128xf32, #tpu.memory_space<vmem>>, %arg7: memref<128x64xbf16, #tpu.memory_space<vmem>>, %arg8: memref<1x64xf32, #tpu.memory_space<vmem>>, %arg9: memref<1x32xf32, #tpu.memory_space<vmem>>, %arg10: memref<1x32xf32, #tpu.memory_space<vmem>>, %arg11: memref<8x32xf32, #tpu.memory_space<vmem>>, %arg12: memref<8x64xf32, #tpu.memory_space<vmem>>) attributes {dimension_semantics = [#tpu.dimension_semantics<parallel>, #tpu.dimension_semantics<arbitrary>], iteration_bounds = array<i64: 2, 1>, scalar_prefetch = 0 : i64, scratch_operands = 1 : i64, tpu.core_type = #tpu.core_type<tc>, window_params = [{transform_indices = @transform_0, window_bounds = array<i64: 8, 32>}, {transform_indices = @transform_1, window_bounds = array<i64: 32, 128>}, {transform_indices = @transform_2, window_bounds = array<i64: 32, 128>}, {transform_indices = @transform_3, window_bounds = array<i64: 1, 128>}, {transform_indices = @transform_4, window_bounds = array<i64: 1, 128>}, {transform_indices = @transform_5, window_bounds = array<i64: 128, 64>}, {pipeline_mode = #tpu.pipeline_mode<synchronous>, transform_indices = @transform_6, window_bounds = array<i64: 1, 64>}, {pipeline_mode = #tpu.pipeline_mode<synchronous>, transform_indices = @transform_7, window_bounds = array<i64: 1, 32>}, {pipeline_mode = #tpu.pipeline_mode<synchronous>, transform_indices = @transform_8, window_bounds = array<i64: 1, 32>}, {transform_indices = @transform_9, window_bounds = array<i64: 8, 32>}]} {
    %c0_i32 = arith.constant 0 : i32
    %0 = arith.cmpi eq, %arg1, %c0_i32 : i32
    %1 = arith.extui %0 : i1 to i32
    %c0_i32_0 = arith.constant 0 : i32
    %2 = arith.cmpi ne, %1, %c0_i32_0 : i32
    scf.if %2 {
      %cst_21 = arith.constant 0.000000e+00 : f32
      %31 = vector.broadcast %cst_21 : f32 to vector<8x64xf32>
      %c0_22 = arith.constant 0 : index
      %c0_23 = arith.constant 0 : index
      %32 = vector.load %arg12[%c0_22, %c0_23] : memref<8x64xf32, #tpu.memory_space<vmem>>, vector<8x64xf32>
      tpu.vector_store %arg12[%c0_22, %c0_23], %31 {strides = array<i32>} : memref<8x64xf32, #tpu.memory_space<vmem>>, vector<8x64xf32>,
    } else {
    }
    %c0 = arith.constant 0 : index
    %c0_1 = arith.constant 0 : index
    %3 = vector.load %arg2[%c0, %c0_1] : memref<8x32xf32, #tpu.memory_space<vmem>>, vector<8x32xf32>
    %4 = arith.truncf %3 : vector<8x32xf32> to vector<8x32xbf16>
    %c0_2 = arith.constant 0 : index
    %c0_3 = arith.constant 0 : index
    %5 = vector.load %arg3[%c0_2, %c0_3] : memref<32x128xbf16, #tpu.memory_space<vmem>>, vector<32x128xbf16>
    %cst = arith.constant dense<0.000000e+00> : vector<8x128xf32>
    %6 = tpu.matmul %4, %5, %cst {dimension_numbers = #tpu.dot_dimension_numbers<[1], [0], [0], [1], [0, 0, 1, 1], [], []>} : vector<8x32xbf16>, vector<32x128xbf16>, vector<8x128xf32> -> vector<8x128xf32>
    %c0_4 = arith.constant 0 : index
    %c0_5 = arith.constant 0 : index
    %7 = vector.load %arg5[%c0_4, %c0_5] : memref<1x128xf32, #tpu.memory_space<vmem>>, vector<1x128xf32>
    %8 = vector.broadcast %7 : vector<1x128xf32> to vector<8x128xf32>
    %9 = arith.addf %6, %8 : vector<8x128xf32>
    %c0_6 = arith.constant 0 : index
    %c0_7 = arith.constant 0 : index
    %10 = vector.load %arg4[%c0_6, %c0_7] : memref<32x128xbf16, #tpu.memory_space<vmem>>, vector<32x128xbf16>
    %cst_8 = arith.constant dense<0.000000e+00> : vector<8x128xf32>
    %11 = tpu.matmul %4, %10, %cst_8 {dimension_numbers = #tpu.dot_dimension_numbers<[1], [0], [0], [1], [0, 0, 1, 1], [], []>} : vector<8x32xbf16>, vector<32x128xbf16>, vector<8x128xf32> -> vector<8x128xf32>
    %c0_9 = arith.constant 0 : index
    %c0_10 = arith.constant 0 : index
    %12 = vector.load %arg6[%c0_9, %c0_10] : memref<1x128xf32, #tpu.memory_space<vmem>>, vector<1x128xf32>
    %13 = vector.broadcast %12 : vector<1x128xf32> to vector<8x128xf32>
    %14 = arith.addf %11, %13 : vector<8x128xf32>
    %15 = arith.truncf %9 : vector<8x128xf32> to vector<8x128xbf16>
    %16 = arith.truncf %14 : vector<8x128xf32> to vector<8x128xbf16>
    %17 = arith.negf %16 : vector<8x128xbf16>
    %18 = math.exp %17 : vector<8x128xbf16>
    %cst_11 = arith.constant 1.000000e+00 : bf16
    %19 = vector.broadcast %cst_11 : bf16 to vector<8x128xbf16>
    %20 = arith.addf %19, %18 : vector<8x128xbf16>
    %21 = arith.divf %19, %20 : vector<8x128xbf16>
    %22 = arith.mulf %15, %21 : vector<8x128xbf16>
    %c0_12 = arith.constant 0 : index
    %c0_13 = arith.constant 0 : index
    %23 = vector.load %arg12[%c0_12, %c0_13] : memref<8x64xf32, #tpu.memory_space<vmem>>, vector<8x64xf32>
    %c0_14 = arith.constant 0 : index
    %c0_15 = arith.constant 0 : index
    %24 = vector.load %arg7[%c0_14, %c0_15] : memref<128x64xbf16, #tpu.memory_space<vmem>>, vector<128x64xbf16>
    %cst_16 = arith.constant dense<0.000000e+00> : vector<8x64xf32>
    %25 = tpu.matmul %22, %24, %cst_16 {dimension_numbers = #tpu.dot_dimension_numbers<[1], [0], [0], [1], [0, 0, 1, 1], [], []>} : vector<8x128xbf16>, vector<128x64xbf16>, vector<8x64xf32> -> vector<8x64xf32>
    %26 = arith.addf %23, %25 : vector<8x64xf32>
    %c0_17 = arith.constant 0 : index
    %c0_18 = arith.constant 0 : index
    %27 = vector.load %arg12[%c0_17, %c0_18] : memref<8x64xf32, #tpu.memory_space<vmem>>, vector<8x64xf32>
    tpu.vector_store %arg12[%c0_17, %c0_18], %26 {strides = array<i32>} : memref<8x64xf32, #tpu.memory_space<vmem>>, vector<8x64xf32>,
    %c0_i32_19 = arith.constant 0 : i32
    %28 = arith.cmpi eq, %arg1, %c0_i32_19 : i32
    %29 = arith.extui %28 : i1 to i32
    %c0_i32_20 = arith.constant 0 : i32
    %30 = arith.cmpi ne, %29, %c0_i32_20 : i32
    scf.if %30 {
      %c0_21 = arith.constant 0 : index
      %c0_22 = arith.constant 0 : index
      %31 = vector.load %arg12[%c0_21, %c0_22] : memref<8x64xf32, #tpu.memory_space<vmem>>, vector<8x64xf32>
      %c0_23 = arith.constant 0 : index
      %c0_24 = arith.constant 0 : index
      %32 = vector.load %arg8[%c0_23, %c0_24] : memref<1x64xf32, #tpu.memory_space<vmem>>, vector<1x64xf32>
      %33 = vector.broadcast %32 : vector<1x64xf32> to vector<8x64xf32>
      %34 = arith.addf %31, %33 : vector<8x64xf32>
      %35 = vector.extract_strided_slice %34 {offsets = [0, 0], sizes = [8, 32], strides = [1, 1]} : vector<8x64xf32> to vector<8x32xf32>
      %36 = vector.extract_strided_slice %34 {offsets = [0, 32], sizes = [8, 32], strides = [1, 1]} : vector<8x64xf32> to vector<8x32xf32>
      %37 = arith.negf %36 : vector<8x32xf32>
      %38 = math.exp %37 : vector<8x32xf32>
      %cst_25 = arith.constant 1.000000e+00 : f32
      %39 = vector.broadcast %cst_25 : f32 to vector<8x32xf32>
      %40 = arith.addf %39, %38 : vector<8x32xf32>
      %41 = arith.divf %39, %40 : vector<8x32xf32>
      %42 = arith.mulf %35, %41 : vector<8x32xf32>
      %c0_26 = arith.constant 0 : index
      %c0_27 = arith.constant 0 : index
      %43 = vector.load %arg2[%c0_26, %c0_27] : memref<8x32xf32, #tpu.memory_space<vmem>>, vector<8x32xf32>
      %44 = arith.addf %42, %43 : vector<8x32xf32>
      %cst_28 = arith.constant dense<0.000000e+00> : vector<8xf32>
      %45 = vector.multi_reduction <add>, %44, %cst_28 [1] : vector<8x32xf32> to vector<8xf32>
      %46 = vector.shape_cast %45 : vector<8xf32> to vector<8x1xf32>
      %cst_29 = arith.constant 3.200000e+01 : f32
      %47 = vector.broadcast %cst_29 : f32 to vector<8x1xf32>
      %48 = arith.divf %46, %47 : vector<8x1xf32>
      %49 = vector.broadcast %48 : vector<8x1xf32> to vector<8x32xf32>
      %50 = arith.subf %44, %49 : vector<8x32xf32>
      %51 = arith.mulf %50, %50 : vector<8x32xf32>
      %cst_30 = arith.constant dense<0.000000e+00> : vector<8xf32>
      %52 = vector.multi_reduction <add>, %51, %cst_30 [1] : vector<8x32xf32> to vector<8xf32>
      %53 = vector.shape_cast %52 : vector<8xf32> to vector<8x1xf32>
      %cst_31 = arith.constant 3.200000e+01 : f32
      %54 = vector.broadcast %cst_31 : f32 to vector<8x1xf32>
      %55 = arith.divf %53, %54 : vector<8x1xf32>
      %cst_32 = arith.constant 9.99999974E-6 : f32
      %56 = vector.broadcast %cst_32 : f32 to vector<8x1xf32>
      %57 = arith.addf %55, %56 : vector<8x1xf32>
      %58 = math.rsqrt %57 : vector<8x1xf32>
      %59 = vector.broadcast %58 : vector<8x1xf32> to vector<8x32xf32>
      %60 = arith.mulf %50, %59 : vector<8x32xf32>
      %c0_33 = arith.constant 0 : index
      %c0_34 = arith.constant 0 : index
      %61 = vector.load %arg9[%c0_33, %c0_34] : memref<1x32xf32, #tpu.memory_space<vmem>>, vector<1x32xf32>
      %62 = vector.broadcast %61 : vector<1x32xf32> to vector<8x32xf32>
      %63 = arith.mulf %60, %62 : vector<8x32xf32>
      %c0_35 = arith.constant 0 : index
      %c0_36 = arith.constant 0 : index
      %64 = vector.load %arg10[%c0_35, %c0_36] : memref<1x32xf32, #tpu.memory_space<vmem>>, vector<1x32xf32>
      %65 = vector.broadcast %64 : vector<1x32xf32> to vector<8x32xf32>
      %66 = arith.addf %63, %65 : vector<8x32xf32>
      %c0_37 = arith.constant 0 : index
      %c0_38 = arith.constant 0 : index
      %67 = vector.load %arg11[%c0_37, %c0_38] : memref<8x32xf32, #tpu.memory_space<vmem>>, vector<8x32xf32>
      tpu.vector_store %arg11[%c0_37, %c0_38], %66 {strides = array<i32>} : memref<8x32xf32, #tpu.memory_space<vmem>>, vector<8x32xf32>,
    } else {
    }
    return
  }
  func.func @transform_0(%arg0: i32, %arg1: i32) -> (i32, i32) {
    %c0_i32 = arith.constant 0 : i32
    %c0_i32_0 = arith.constant 0 : i32
    return %arg0, %c0_i32 : i32, i32
  }
  func.func @transform_1(%arg0: i32, %arg1: i32) -> (i32, i32) {
    %c0_i32 = arith.constant 0 : i32
    %c0_i32_0 = arith.constant 0 : i32
    return %c0_i32, %arg1 : i32, i32
  }
  func.func @transform_2(%arg0: i32, %arg1: i32) -> (i32, i32) {
    %c0_i32 = arith.constant 0 : i32
    %c0_i32_0 = arith.constant 0 : i32
    return %c0_i32, %arg1 : i32, i32
  }
  func.func @transform_3(%arg0: i32, %arg1: i32) -> (i32, i32) {
    %c0_i32 = arith.constant 0 : i32
    %c0_i32_0 = arith.constant 0 : i32
    return %c0_i32, %arg1 : i32, i32
  }
  func.func @transform_4(%arg0: i32, %arg1: i32) -> (i32, i32) {
    %c0_i32 = arith.constant 0 : i32
    %c0_i32_0 = arith.constant 0 : i32
    return %c0_i32, %arg1 : i32, i32
  }
  func.func @transform_5(%arg0: i32, %arg1: i32) -> (i32, i32) {
    %c0_i32 = arith.constant 0 : i32
    %c0_i32_0 = arith.constant 0 : i32
    return %arg1, %c0_i32 : i32, i32
  }
  func.func @transform_6(%arg0: i32, %arg1: i32) -> (i32, i32) {
    %c0_i32 = arith.constant 0 : i32
    %c0_i32_0 = arith.constant 0 : i32
    %c0_i32_1 = arith.constant 0 : i32
    return %c0_i32, %c0_i32_0 : i32, i32
  }
  func.func @transform_7(%arg0: i32, %arg1: i32) -> (i32, i32) {
    %c0_i32 = arith.constant 0 : i32
    %c0_i32_0 = arith.constant 0 : i32
    %c0_i32_1 = arith.constant 0 : i32
    return %c0_i32, %c0_i32_0 : i32, i32
  }
  func.func @transform_8(%arg0: i32, %arg1: i32) -> (i32, i32) {
    %c0_i32 = arith.constant 0 : i32
    %c0_i32_0 = arith.constant 0 : i32
    %c0_i32_1 = arith.constant 0 : i32
    return %c0_i32, %c0_i32_0 : i32, i32
  }
  func.func @transform_9(%arg0: i32, %arg1: i32) -> (i32, i32) {
    %c0_i32 = arith.constant 0 : i32
    %c0_i32_0 = arith.constant 0 : i32
    return %arg0, %c0_i32 : i32, i32
  }
}

</mosaic_0001>

<bundles_post_ra>
// kernel: tpu_custom_call.1
= control target key start
LH: loop header
LB: loop body
LE: loop exit
PB: predicated region body
PF: predicated region fallthrough
CT: control target
= control target key end

     0   :  { %s1353_s0 = inlined_call_operand.vmem [shape: f32[16,32], index: 0, kind: input, shape index: {}]   ;;  %s1354_s1 = inlined_call_operand.vmem [shape: bf16[32,128], index: 1, kind: input, shape index: {}]   ;;  %s1355_s2 = inlined_call_operand.vmem [shape: bf16[32,128], index: 2, kind: input, shape index: {}]   ;;  %s1356_s3 = inlined_call_operand.vmem [shape: f32[1,128], index: 3, kind: input, shape index: {}]   ;;  %s1357_s4 = inlined_call_operand.vmem [shape: f32[1,128], index: 4, kind: input, shape index: {}]   ;;  %s1358_s5 = inlined_call_operand.vmem [shape: bf16[128,64], index: 5, kind: input, shape index: {}]   ;;  %s1359_s6 = inlined_call_operand.vmem [shape: f32[1,64], index: 6, kind: input, shape index: {}]   ;;  %s1360_s7 = inlined_call_operand.vmem [shape: f32[1,32], index: 7, kind: input, shape index: {}]   ;;  %s1361_s8 = inlined_call_operand.vmem [shape: f32[1,32], index: 8, kind: input, shape index: {}]   ;;  %s1362_s9 = inlined_call_operand.hbm [shape: f32[16,32], index: 9, kind: output, shape index: {}]  }
   0x1   :  { %1363 = sst [smem:[#allocation6_spill]] %s1353_s0 }
   0x2   :  { %1364 = sst [smem:[#allocation7_spill]] %s1354_s1 }
   0x3   :  { %14 = vsyncpa [#allocation4], 0 }
   0x4   :  { %16 = vsyncpa [#allocation4 + $0x1], 0  ;;  %s1188_s30 = smov 0   ;;  %s1190_s10 = smov 0  }
   0x5   :  { %s1192_s11 = smov 0   ;;  %s1194_s12 = smov 0  }
   0x6   :  { %s1196_s13 = smov 0   ;;  %s1198_s14 = smov 0  }
   0x7 LB: > { %s888_s15 = sadd.s32 4294967295, %s1132_s14   ;;  %s889_s16 = sadd.s32 4294967294, %s1132_s14   ;;  %s1132_s14 = sphi %s1198_s14, %s22_s14   ;;  %s1128_s13 = sphi %s1196_s13, %s1373_s13   ;;  %s1124_s12 = sphi %s1194_s12, %s1372_s12   ;;  %s1120_s11 = sphi %s1192_s11, %s1371_s11   ;;  %s1116_s10 = sphi %s1190_s10, %s1370_s10   ;;  %s1112_s30 = sphi %s1188_s30, %s1369_s30  }
   0x8   : > { %s34_s17 = sadd.s32 1, %s1128_s13  ;;  %s260_s18 = sadd.s32 1, %s1120_s11 }
   0x9   : > { %p36_p0 = scmp.ge.s32.totalorder %s34_s17, 2  ;;  %p270_p1 = scmp.ne.s32.totalorder %s1120_s11, %s1116_s10 }
   0xa   : > { %p271_p2 = scmp.eq.s32.totalorder %s888_s15, 1  ;;  %p276_p3 = scmp.ne.s32.totalorder %s1116_s10, %s1112_s30 }
   0xb   : > { %s1375_s17 = smov (%p36_p0, %s34_s17), 0  ;;  %p277_p5 = scmp.eq.s32.totalorder %s889_s16, 1 }
   0xc   : > { %p1228_p4 = por %p271_p2, %p270_p1  ;;  %s257_s20 = ssub.s32 %s1128_s13, %s1375_s17 }
   0xd   : > { %p897_p6 = scmp.ge.s32.totalorder %s1132_s14, 1  ;;  %p258_p7 = scmp.eq.s32.totalorder %s257_s20, 0 }
   0xe   : > { %p1235_p8 = por %p277_p5, %p276_p3  ;;  %p346_p9 = scmp.lt.s32.totalorder %s1132_s14, 3 }
   0xf   : > { %s1241_s22 = scalar_select %p258_p7, %s1120_s11, %s260_s18  }
  0x10   : > { %p347_p10 = pnand %p897_p6, %p346_p9 }
  0x11   : > { %s1367_s1 = sld [smem:[#allocation7_spill]] (!%p347_p10)  ;;  %p400_p11 = scmp.lt.s32.totalorder (!%p347_p10), %s1124_s12, 1 }
  0x12   : > { %350 = sbr.rel (%p347_p10) target bundleno = 952 (0x3b8), region = 56  ;;  %s1368_s0 = sld [smem:[#allocation6_spill]] (!%p347_p10) }
  0x13   : > { %s1136_s25 = smov (!%p347_p10), 96   ;;  %s397_s26 = sand.u32 (!%p347_p10), 1, %s1116_s10  }
  0x14   : > { %s922_s18 = sshll.u32 (!%p347_p10), %s1124_s12, 7  ;;  %s1137_s29 = smov (!%p347_p10), [#allocation3]  }
  0x15   : > { %s1060_s15 = sshll.u32 (!%p347_p10), %s1137_s29, 4  ;;  %s1061_s15 = int_to_ptr.vmem [resolvable:$false] %s1060_s15 }
  0x17   : > { %v1034_v0 = vld [vmem:[%s1367_s1 + $0x8] sm:$0xff]   ;;  %v1134_v1 = vmov 0.0   ;;  %v1035_v2 = vld [vmem:[%s1367_s1] sm:$0xff]   ;;  %vm1135_vm0 = vmmov 0   ;;  %s401_s27 = scalar_select %p400_p11, %s1124_s12, 1  ;;  %vm457_vm1 = vcmask 261120  }
  0x18   : > { %940 = vmatprep.subr.bf16.mxu1 %v1134_v1  ;;  %956 = vmatprep.subr.bf16.mxu0 %v1134_v1  ;;  %v1036_v3 = vld [vmem:[%s1355_s2 + $0x8] sm:$0xff]   ;;  %v1037_v6 = vld [vmem:[%s1355_s2] sm:$0xff]   ;;  %v1038_v7 = vld [vmem:[%s1358_s5 + $0x38] sm:$0xff]   ;;  %vm430_vm2 = vcmask 523264   ;;  %s739_s1 = scalar_lea.sflag [#allocation4], %s397_s26  ;;  %s1062_s12 = scalar_lea.vmem %s1061_s15, 256 }
  0x19   : > { %941 = vmatpush3.bf16.msra.mxu1 %v1034_v0  ;;  %944 = vmatprep.mubr.msk.bf16.mxu1 %vm1135_vm0, %v1134_v1  ;;  %s899_s28 = sshll.u32 %s401_s27, 3  ;;  %v1039_v8 = vld [vmem:[%s1358_s5 + $0x30] sm:$0xff]   ;;  %v1040_v9 = vld [vmem:[%s1358_s5 + $0x28] sm:$0xff]   ;;  %v1041_v10 = vld [vmem:[%s1358_s5 + $0x20] sm:$0xff]   ;;  %431 = vst.msk [vmem:[#allocation2] sm:$0xff] %vm430_vm2, %v1134_v1  ;;  %s898_s27 = sshll.u32 %s397_s26, 3 }
  0x1a   : > { %942 = vmatprep.subr.bf16.mxu1 %v1134_v1  ;;  %972 = vmatprep.mubr.msk.bf16.mxu0 %vm1135_vm0, %v1134_v1  ;;  %s403_s20 = scalar_lea.vmem %s1368_s0, %s899_s28  ;;  %v1042_v11 = vld [vmem:[%s1358_s5 + $0x18] sm:$0xff]   ;;  %v1043_v12 = vld [vmem:[%s1358_s5 + $0x10] sm:$0xff]   ;;  %v1044_v13 = vld [vmem:[%s1358_s5 + $0x8] sm:$0xff]   ;;  %s750_s0 = scalar_lea.hbm %s1362_s9, %s922_s18 }
  0x1b   : > { %v1259_v4 = vld [vmem:[%s403_s20] sm:$0xff]  ;;  %957 = vmatpush3.bf16.msra.mxu0 %v1038_v7  ;;  %s399_s20 = scalar_lea.vmem [#allocation3], %s898_s27 }
  0x1c   : > { %v433_v5 = vpack.c.bf16 %v1259_v4, %v1259_v4  ;;  %958 = vmatprep.subr.bf16.mxu0 %v1134_v1  ;;  %v1045_v14 = vld [vmem:[%s1358_s5] sm:$0xff]   ;;  %s752_s23 = sshll.u32 %s399_s20, 4  ;;  %s753_s23 = int_to_ptr.vmem [resolvable:$true] %s752_s23 }
  0x1d   : > { %943 = vmatpush3.bf16.msra.mxu1 %v1035_v2  ;;  %v904_v19 = vld [vmem:[%s1357_s4] ss:$0 sm:$0xff]  ;;  %s1056_s28 = scalar_lea.vmem %s753_s23, 128  ;;  %p1063_p1 = scmp.lt.s32.totalorder %s753_s23, %s1061_s15 }
  0x1e   : > { %948 = vmatprep.subr.bf16.mxu1 %v1134_v1  ;;  %v900_v29 = vld [vmem:[%s1356_s3] ss:$0 sm:$0xff]  ;;  %p1057_p12 = scmp.ne.s32.totalorder %s753_s23, %s1056_s28  ;;  %p1064_p2 = scmp.lt.s32.totalorder %s1062_s12, %s1056_s28 }
  0x1f   : > { %959 = vmatpush3.bf16.msra.mxu0 %v1039_v8  ;;  %v917_v41 = vld [vmem:[%s1359_s6] ss:$0 sm:$0xff] }
  0x20   : > { %945 = vmatmul.mubr.msk.bf16.vlgmr.msra.gmra.mxu1 %vm457_vm1, %v433_v5  ;;  %960 = vmatprep.subr.bf16.mxu0 %v1134_v1  ;;  %v574_v35 = vld [vmem:[#allocation2] sm:$0xff]  ;;  %p1058_p13 = pnand %p1057_p12, %p1228_p4  ;;  %p1065_p3 = por %p1064_p2, %p1063_p1 }
  0x21   : > { %949 = vmatpush3.bf16.msra.mxu1 %v1036_v3  ;;  %952 = vmatprep.mubr.msk.bf16.mxu1 %vm1135_vm0, %v1134_v1  ;;  %v919_v61 = vld [vmem:[%s1360_s7] ss:$0 sm:$0xff] }
  0x22   : > { %950 = vmatprep.subr.bf16.mxu1 %v1134_v1  ;;  %v920_v63 = vld [vmem:[%s1361_s8] ss:$0 sm:$0xff]  ;;  %p1059_p0 = pneg %p1058_p13 }
  0x23   : > { %961 = vmatpush3.bf16.msra.mxu0 %v1040_v9 }
  0x24   : > { %962 = vmatprep.subr.bf16.mxu0 %v1134_v1  ;;  %p1066_p5 = pnand %p1065_p3, %p1059_p0 }
  0x25   : > { %951 = vmatpush3.bf16.msra.mxu1 %v1037_v6 }
  0x27   : > { %963 = vmatpush3.bf16.msra.mxu0 %v1041_v10 }
  0x28   : > { %953 = vmatmul.mubr.msk.bf16.vlgmr.msra.gmra.mxu1 %vm457_vm1, %v433_v5  ;;  %964 = vmatprep.subr.bf16.mxu0 %v1134_v1 }
  0x2b   : > { %965 = vmatpush3.bf16.msra.mxu0 %v1042_v11 }
  0x2c   : > { %966 = vmatprep.subr.bf16.mxu0 %v1134_v1 }
  0x2f   : > { %967 = vmatpush3.bf16.msra.mxu0 %v1043_v12 }
  0x30   : > { %968 = vmatprep.subr.bf16.mxu0 %v1134_v1 }
  0x33   : > { %969 = vmatpush3.bf16.msra.mxu0 %v1044_v13 }
  0x34   : > { %970 = vmatprep.subr.bf16.mxu0 %v1134_v1 }
  0x37   : > { %971 = vmatpush3.bf16.msra.mxu0 %v1045_v14 }
  0xe0   : > { %v495_v15 = vpop.f32.mrf.mxu1 }
  0xe1   : > { %v496_v30 = vadd.f32 %v900_v29, %v495_v15 }
  0xe2   : > { %v946_v16 = vpop.f32.mrf.mxu1 }
  0xe3   : > { %v564_v32 = vpack.c.bf16 %v496_v30, %v496_v30 }
  0xe4   : > { %v498_v17 = vpop.f32.mrf.mxu1 }
  0xe6   : > { %v947_v18 = vpop.f32.mrf.mxu1 }
  0xe8   : > { %v558_v20 = vpop.f32.mrf.mxu1 }
  0xe9   : > { %v559_v21 = vadd.f32 %v904_v19, %v558_v20 }
  0xea   : > { %v954_v22 = vpop.f32.mrf.mxu1 }
  0xeb   : > { %v565_v23 = vpack.c.bf16 %v559_v21, %v559_v21 }
  0xec   : > { %v561_v24 = vpop.f32.mrf.mxu1 }
  0xed   : > { %v908_v25 = vmul.bf16 3216621497, %v565_v23 }
  0xee   : > { %v955_v26 = vpop.f32.mrf.mxu1 }
  0xef   : > { %1046 = vpow.bf16 %v908_v25 }
  0xfd   : > { %v1047_v27 = vpop.eup %1046 }
  0xfe   : > { %v570_v28 = vadd.bf16 1065369472, %v1047_v27 }
 0x100   : > { %1048 = vrcp.bf16 %v570_v28 }
 0x10e   : > { %v1049_v31 = vpop.eup %1048 }
 0x10f   : > { %v572_v33 = vmul.bf16 1065369472, %v1049_v31 }
 0x111   : > { %v573_v34 = vmul.bf16 %v572_v33, %v564_v32 }
 0x113   : > { %973 = vmatmul.mubr.bf16.vlgmr.msra.gmra.mxu0 %v573_v34 }
 0x1d3   : > { %v673_v36 = vpop.f32.mrf.mxu0 }
 0x1d4   : > { %v679_v37 = vadd.f32 %v673_v36, %v574_v35 }
 0x1d5   : > { %v974_v38 = vpop.f32.mrf.mxu0 }
 0x1d6   : > { %681 = vst.msk [vmem:[#allocation2] sm:$0xff] %vm430_vm2, %v679_v37 }
 0x1d7   : > { %v676_v39 = vpop.f32.mrf.mxu0 }
 0x1d9   : > { %v975_v40 = vpop.f32.mrf.mxu0 }
 0x1dd   : > { %v685_v42 = vld [vmem:[#allocation2] sm:$0xff] }
 0x1de   : > { %v693_v43 = vadd.f32 %v917_v41, %v685_v42 }
 0x1e0   : > { %v918_v44 = vmul.f32 -1.442695, %v693_v43 }
 0x1e2   : > { %1050 = vpow2.f32 %v918_v44 }
 0x1ef   : > { %v1051_v45 = vpop.eup %1050 }
 0x1f0   : > { %v697_v46 = vadd.f32 1.0, %v1051_v45 }
 0x1f2   : > { %1052 = vrcp.f32 %v697_v46 }
 0x1ff   : > { %v1053_v47 = vpop.eup %1052 }
 0x200   : > { %701 = vrot.lane.b32.xlu0 %v1053_v47, %s1136_s25 }
 0x272   : > { %v702_v48 = vpop.permute.xlu0 %701 }
 0x273   : > { %v704_v49 = vmul.f32 %v702_v48, %v693_v43 }
 0x275   : > { %v706_v50 = vadd.f32 %v704_v49, %v1259_v4 }
 0x277   : > { %v707_v51 = vsel %vm457_vm1, %v706_v50, 0.0 }
 0x278   : > { %708 = vadd.xlane.f32.xlu0 %v707_v51 }
 0x301   : > { %v709_v52 = vpop.xlane.xlu0 %708 }
 0x302   : > { %v711_v53 = vmul.f32 0.03125, %v709_v52 }
 0x304   : > { %v712_v54 = vsub.f32 %v706_v50, %v711_v53 }
 0x306   : > { %v713_v55 = vmul.f32 %v712_v54, %v712_v54 }
 0x308   : > { %v714_v56 = vsel %vm457_vm1, %v713_v55, 0.0 }
 0x309   : > { %715 = vadd.xlane.f32.xlu1 %v714_v56 }
 0x392   : > { %v716_v57 = vpop.xlane.xlu1 %715 }
 0x393   : > { %v717_v58 = vmul.f32 0.03125, %v716_v57 }
 0x395   : > { %v718_v59 = vadd.f32 1e-05, %v717_v58 }
 0x397   : > { %1054 = vrsqrt.f32 %v718_v59 }
 0x3a4   : > { %v1055_v60 = vpop.eup %1054 }
 0x3a5   : > { %v720_v62 = vmul.f32 %v1055_v60, %v712_v54 }
 0x3a7   : > { %v728_v0 = vmul.f32 %v919_v61, %v720_v62 }
 0x3a9   : > { %v736_v1 = vadd.f32 %v920_v63, %v728_v0 }
 0x3ab   : > { %737 = vst.msk [vmem:[%s399_s20] sm:$0xff] %vm457_vm1, %v736_v1 }
 0x3ac   : > { %1069 = shalt.err (!%p1066_p5)
}
 0x3ad   : > { %s1070_s27 = scalar_lea.hbm %s750_s0, 128  ;;  %s1074_s18 = scalar_lea.hbm %s1362_s9, 256 }
 0x3ae   : > { %p1071_p6 = scmp.ne.s32.totalorder %s750_s0, %s1070_s27  ;;  %p1075_p10 = scmp.lt.s32.totalorder %s750_s0, %s1362_s9 }
 0x3af   : > { %p1076_p11 = scmp.lt.s32.totalorder %s1074_s18, %s1070_s27 }
 0x3b0   : > { %p1072_p7 = pnand %p1071_p6, %p1228_p4 }
 0x3b1   : > { %p1077_p12 = por %p1076_p11, %p1075_p10 }
 0x3b2   : > { %p1073_p9 = pneg %p1072_p7 }
 0x3b4   : > { %p1078_p13 = pnand %p1077_p12, %p1073_p9 }
 0x3b6   : > { %1081 = shalt.err (!%p1078_p13)
}
 0x3b7   : > { %976 = dma.vmem_to_hbm [thread:$0]  (%p1228_p4), %s753_s23, 128, %s750_s0, %s739_s1  }
 0x3b8 PF: > { %p982_p0 = scmp.ge.s32.totalorder %s1132_s14, 2  ;;  %s764_s25 = sand.u32 1, %s1112_s30  }
 0x3b9   : > { %s765_s28 = scalar_lea.sflag [#allocation4], %s764_s25 }
 0x3ba   : > { %p979_p1 = pnand %p982_p0, %p1235_p8 }
 0x3bc   : > { %p980_p2 = pneg %p979_p1 }
 0x3be   : > { %1107 = dma.done.wait (%p980_p2), %s765_s28, 128  }
 0x3bf   : > { %1109 = vsyncadd (%p980_p2), %s765_s28, 4294967168  ;;  %s22_s14 = sadd.s32 1, %s1132_s14   ;;  %s1369_s30 = smov %s1116_s10 }
 0x3c0   : > { %p19_p3 = scmp.ge.s32.totalorder %s22_s14, 4   ;;  %s1370_s10 = smov %s1120_s11 }
 0x3c1   : > { %s1371_s11 = smov %s1241_s22  ;;  %s1372_s12 = smov %s1128_s13 }
 0x3c2   : > { %s1373_s13 = smov %s1375_s17  ;;  %21 = sbr.rel (!%p19_p3) target bundleno = 7 (0x7), region = 114 }
 0x3c7   :  { %770 = vsyncpa [#allocation4], 1 }
 0x3c8   :  { %772 = vsyncpa [#allocation4 + $0x1], 1 }

</bundles_post_ra>
